<compile_context>
chip_gen: v5e
topology: v5e:2x2
jax: 0.10.0
libtpu: 0.0.40
codegen_flags: <defaults>
</compile_context>

<pallas_src>
import jax
import jax.numpy as jnp
from jax import lax
from jax.experimental import pallas as pl
from jax.experimental.pallas import tpu as pltpu


# ---------------------------------------------------------------------------
# Pallas kernel: one grid step == full Viterbi recursion for one batch element.
# ---------------------------------------------------------------------------
def _viterbi_kernel(mask_ref, feats_ref, trans_ref, bp_ref, last_ref):
    # mask_ref : SMEM (batch, seq) int32   (scalar prefetch)
    # feats_ref: VMEM (seq, tag)   f32     (one batch element, batch squeezed)
    # trans_ref: VMEM (tag, tag)   f32
    # bp_ref   : VMEM (seq, tag)   int32   out, PyTorch back_points layout
    # last_ref : VMEM (1, tag)     f32     out, partition at position length-1
    b = pl.program_id(0)
    seq_len, tag = feats_ref.shape

    trans = trans_ref[...]                                      # hoisted
    idx3 = lax.broadcasted_iota(jnp.int32, (1, tag, tag), 1)    # hoisted

    # t = 0 : partition[j] = feats[0, j] + transitions[START_TAG_IDX, j]
    part0 = feats_ref[0:1, :] + trans[tag - 2:tag - 1, :]       # (1, tag)

    def step(t, carry):
        part, latch = carry                                     # (1, tag) each
        f_t = feats_ref[pl.ds(t, 1), :]                         # (1, tag)
        # cur[0, i, j] = part[i] + trans[i, j] + feats[t, j]
        scores_t = f_t[:, None, :] + trans[None, :, :]          # (1, tag, tag)
        cur = scores_t + part[:, :, None]                       # (1, tag, tag)
        new_part = jnp.max(cur, axis=1)                         # (1, tag)
        # first-max argmax over the previous-tag axis (explicit iota/where/min
        # instead of relying on an in-kernel argmax lowering)
        is_max = cur == new_part[:, None, :]
        bp_row = jnp.min(jnp.where(is_max, idx3, tag), axis=1).astype(jnp.int32)
        m_t = mask_ref[b, t]                                    # scalar int32
        bp_row = jnp.where(m_t == 0, jnp.zeros_like(bp_row), bp_row)
        bp_ref[pl.ds(t - 1, 1), :] = bp_row                     # back_points[t-1]
        latch = jnp.where(m_t == 0, latch, new_part)            # value at len-1
        return new_part, latch

    unroll = True if seq_len <= 32 else 4
    _, latch = lax.fori_loop(1, seq_len, step, (part0, part0), unroll=unroll)

    bp_ref[seq_len - 1:seq_len, :] = jnp.zeros((1, tag), jnp.int32)  # pad row
    last_ref[...] = latch


def _run_viterbi_kernel(feats, mask_i32, transitions):
    batch, seq_len, tag = feats.shape
    return pl.pallas_call(
        _viterbi_kernel,
        out_shape=(
            jax.ShapeDtypeStruct((batch, seq_len, tag), jnp.int32),
            jax.ShapeDtypeStruct((batch, 1, tag), jnp.float32),
        ),
        grid_spec=pltpu.PrefetchScalarGridSpec(
            num_scalar_prefetch=1,
            grid=(batch,),
            in_specs=[
                pl.BlockSpec((None, seq_len, tag), lambda b, mask_ref: (b, 0, 0)),
                pl.BlockSpec((tag, tag), lambda b, mask_ref: (0, 0)),
            ],
            out_specs=[
                pl.BlockSpec((None, seq_len, tag), lambda b, mask_ref: (b, 0, 0)),
                pl.BlockSpec((None, 1, tag), lambda b, mask_ref: (b, 0, 0)),
            ],
        ),
        compiler_params=pltpu.CompilerParams(
            dimension_semantics=("parallel",),
        ),
    )(mask_i32, feats, transitions)


# ---------------------------------------------------------------------------
# CRF forward (== _viterbi_decode).  Tiny glue / backtrace in plain JAX.
# ---------------------------------------------------------------------------
@jax.jit
def crf_forward(feats, mask, transitions):
    """
    feats : (batch, seq_len, tag_size) float32
    mask  : (batch, seq_len) int 0/1 (prefix mask)
    returns decode_idx (batch, seq_len) int32  (path_score is None in the module)
    """
    batch, seq_len, tag = feats.shape
    feats_f32 = feats.astype(jnp.float32)
    mask_i32 = mask.astype(jnp.int32)
    trans_f32 = transitions.astype(jnp.float32)

    bp_raw, last_part = _run_viterbi_kernel(feats_f32, mask_i32, trans_f32)
    last_part = last_part[:, 0, :]                              # (batch, tag)

    length = jnp.sum(mask_i32, axis=1)                          # (batch,)
    last_pos = length - 1

    # last_bp[b, j] = argmax_i (last_part[b, i] + transitions[i, j])
    last_values = last_part[:, :, None] + trans_f32[None, :, :]
    last_bp = jnp.argmax(last_values, axis=1).astype(jnp.int32)
    pointer = last_bp[:, tag - 1]                               # END_TAG_IDX = -1

    # scatter pointer into back_points at position length-1 (per batch, all tags)
    seq_idx = jnp.arange(seq_len)[None, :, None]
    bp_bt = jnp.where(seq_idx == last_pos[:, None, None],
                      pointer[:, None, None], bp_raw)           # (batch, seq, tag)

    # backtrace
    if seq_len > 1:
        bp_tb = jnp.transpose(bp_bt, (1, 0, 2))                 # (seq, batch, tag)

        def body(ptr, bp_t):
            new_ptr = jnp.take_along_axis(bp_t, ptr[:, None], axis=1)[:, 0]
            return new_ptr, new_ptr

        rev_bps = bp_tb[seq_len - 2::-1]                        # (seq-1, batch, tag)
        _, ptrs_rev = lax.scan(body, pointer, rev_bps)
        decode = jnp.concatenate([ptrs_rev[::-1], pointer[None, :]], axis=0)
    else:
        decode = pointer[None, :]
    decode_idx = jnp.transpose(decode, (1, 0)).astype(jnp.int32)  # (batch, seq)
    # TODO(synk): PyTorch returns int64 (LongTensor); int32 used here (x64 off).
    return decode_idx


# ---------------------------------------------------------------------------
# Pure-JAX reference (mirrors the PyTorch code) for correctness checking.
# ---------------------------------------------------------------------------
def crf_forward_ref(feats, mask, transitions):
    batch, seq_len, tag = feats.shape
    feats_t = jnp.transpose(feats, (1, 0, 2))
    mask_t = jnp.transpose(mask, (1, 0))
    scores = feats_t[:, :, None, :] + transitions[None, None, :, :]  # (seq,b,tag,tag)

    partition = scores[0, :, tag - 2, :]                             # (b, tag)
    hist = [partition]
    bps = []
    for t in range(1, seq_len):
        cur = scores[t] + partition[:, :, None]
        partition = jnp.max(cur, axis=1)
        bp = jnp.argmax(cur, axis=1).astype(jnp.int32)
        bp = jnp.where(mask_t[t][:, None] == 0, 0, bp)
        hist.append(partition)
        bps.append(bp)
    bps.append(jnp.zeros((batch, tag), jnp.int32))
    hist = jnp.stack(hist, axis=0)                                   # (seq, b, tag)
    bps = jnp.stack(bps, axis=0)                                     # (seq, b, tag)

    length = jnp.sum(mask, axis=1).astype(jnp.int32)
    last_pos = length - 1
    hist_bt = jnp.transpose(hist, (1, 0, 2))
    last_part = jnp.take_along_axis(
        hist_bt, jnp.broadcast_to(last_pos[:, None, None], (batch, 1, tag)), axis=1
    )[:, 0, :]
    last_values = last_part[:, :, None] + transitions[None, :, :]
    last_bp = jnp.argmax(last_values, axis=1).astype(jnp.int32)
    pointer = last_bp[:, tag - 1]

    bp_bt = jnp.transpose(bps, (1, 0, 2))
    seq_idx = jnp.arange(seq_len)[None, :, None]
    bp_bt = jnp.where(seq_idx == last_pos[:, None, None],
                      pointer[:, None, None], bp_bt)

    decode = [None] * seq_len
    decode[-1] = pointer
    ptr = pointer
    for idx in range(seq_len - 2, -1, -1):
        ptr = jnp.take_along_axis(bp_bt[:, idx, :], ptr[:, None], axis=1)[:, 0]
        decode[idx] = ptr
    return jnp.stack(decode, axis=1).astype(jnp.int32)


if __name__ == "__main__":
    batch, seq_len, target_size = 2, 8, 6
    tag_size = target_size + 2  # +START +END

    # deterministic parameter init, matching CRF.__init__
    transitions = jnp.ones((tag_size, tag_size), jnp.float32) / tag_size
    transitions = transitions.at[:, tag_size - 2].set(-1000.0)   # [:, START_TAG_IDX]
    transitions = transitions.at[tag_size - 1, :].set(-1000.0)   # [END_TAG_IDX, :]

    key = jax.random.PRNGKey(0)
    feats = jax.random.normal(key, (batch, seq_len, tag_size), dtype=jnp.float32)
    lengths = jnp.array([seq_len, 5], dtype=jnp.int32)
    mask = (jnp.arange(seq_len)[None, :] < lengths[:, None]).astype(jnp.int32)

    decode_idx = jax.block_until_ready(crf_forward(feats, mask, transitions))

    ref = crf_forward_ref(feats, mask, transitions)
    assert decode_idx.shape == (batch, seq_len)
    assert jnp.array_equal(decode_idx, ref), (decode_idx, ref)

    print("KERNEL_OK")
</pallas_src>

<mosaic_0001>
module attributes {stable_mosaic.version = 11 : i64} {
  func.func @_viterbi_kernel(%arg0: i32, %arg1: memref<2x8xi32, #tpu.memory_space<smem>>, %arg2: memref<1x8x8xf32, #tpu.memory_space<vmem>>, %arg3: memref<8x8xf32, #tpu.memory_space<vmem>>, %arg4: memref<1x8x8xi32, #tpu.memory_space<vmem>>, %arg5: memref<1x1x8xf32, #tpu.memory_space<vmem>>) attributes {dimension_semantics = [#tpu.dimension_semantics<parallel>], iteration_bounds = array<i64: 2>, scalar_prefetch = 1 : i64, scratch_operands = 0 : i64, tpu.core_type = #tpu.core_type<tc>, window_params = [{transform_indices = @transform_0, window_bounds = array<i64: 1, 8, 8>}, {pipeline_mode = #tpu.pipeline_mode<synchronous>, transform_indices = @transform_1, window_bounds = array<i64: 8, 8>}, {transform_indices = @transform_2, window_bounds = array<i64: 1, 8, 8>}, {transform_indices = @transform_3, window_bounds = array<i64: 1, 1, 8>}]} {
    %c0 = arith.constant 0 : index
    %c0_0 = arith.constant 0 : index
    %0 = vector.load %arg3[%c0, %c0_0] : memref<8x8xf32, #tpu.memory_space<vmem>>, vector<8x8xf32>
    %1 = tpu.iota {dimensions = array<i32: 1>} : vector<1x8x8xi32>
    %c0_1 = arith.constant 0 : index
    %c0_2 = arith.constant 0 : index
    %c0_3 = arith.constant 0 : index
    %2 = vector.load %arg2[%c0_1, %c0_2, %c0_3] : memref<1x8x8xf32, #tpu.memory_space<vmem>>, vector<1x1x8xf32>
    %3 = vector.shape_cast %2 : vector<1x1x8xf32> to vector<1x8xf32>
    %4 = vector.extract_strided_slice %0 {offsets = [6, 0], sizes = [1, 8], strides = [1, 1]} : vector<8x8xf32> to vector<1x8xf32>
    %5 = arith.addf %3, %4 : vector<1x8xf32>
    %c1_i32 = arith.constant 1 : i32
    %c0_4 = arith.constant 0 : index
    %6 = arith.index_cast %c1_i32 : i32 to index
    %c0_5 = arith.constant 0 : index
    %7 = vector.load %arg2[%c0_4, %6, %c0_5] : memref<1x8x8xf32, #tpu.memory_space<vmem>>, vector<1x1x8xf32>
    %8 = vector.shape_cast %7 : vector<1x1x8xf32> to vector<1x8xf32>
    %9 = vector.shape_cast %8 : vector<1x8xf32> to vector<1x1x8xf32>
    %10 = vector.shape_cast %0 : vector<8x8xf32> to vector<1x8x8xf32>
    %11 = vector.broadcast %9 : vector<1x1x8xf32> to vector<1x8x8xf32>
    %12 = arith.addf %11, %10 : vector<1x8x8xf32>
    %13 = vector.shape_cast %5 : vector<1x8xf32> to vector<1x8x1xf32>
    %14 = vector.broadcast %13 : vector<1x8x1xf32> to vector<1x8x8xf32>
    %15 = arith.addf %12, %14 : vector<1x8x8xf32>
    %cst = arith.constant dense<0xFF800000> : vector<1x8xf32>
    %16 = vector.multi_reduction <maximumf>, %15, %cst [1] : vector<1x8x8xf32> to vector<1x8xf32>
    %17 = vector.shape_cast %16 : vector<1x8xf32> to vector<1x1x8xf32>
    %18 = vector.broadcast %17 : vector<1x1x8xf32> to vector<1x8x8xf32>
    %19 = arith.cmpf oeq, %15, %18 : vector<1x8x8xf32>
    %c8_i32 = arith.constant 8 : i32
    %20 = vector.broadcast %c8_i32 : i32 to vector<1x8x8xi32>
    %21 = arith.select %19, %1, %20 : vector<1x8x8xi1>, vector<1x8x8xi32>
    %cst_6 = arith.constant dense<2147483647> : vector<1x8xi32>
    %22 = vector.multi_reduction <minsi>, %21, %cst_6 [1] : vector<1x8x8xi32> to vector<1x8xi32>
    %23 = arith.index_cast %arg0 : i32 to index
    %24 = arith.index_cast %c1_i32 : i32 to index
    %25 = memref.load %arg1[%23, %24] : memref<2x8xi32, #tpu.memory_space<smem>>
    %c0_i32 = arith.constant 0 : i32
    %26 = arith.cmpi eq, %25, %c0_i32 : i32
    %c0_i32_7 = arith.constant 0 : i32
    %27 = vector.broadcast %c0_i32_7 : i32 to vector<1x8xi32>
    %28 = arith.select %26, %27, %22 : vector<1x8xi32>
    %c1_i32_8 = arith.constant 1 : i32
    %29 = arith.subi %c1_i32, %c1_i32_8 : i32
    %c0_9 = arith.constant 0 : index
    %30 = arith.index_cast %29 : i32 to index
    %c0_10 = arith.constant 0 : index
    %31 = vector.load %arg4[%c0_9, %30, %c0_10] : memref<1x8x8xi32, #tpu.memory_space<vmem>>, vector<1x1x8xi32>
    %32 = vector.shape_cast %31 : vector<1x1x8xi32> to vector<1x8xi32>
    %33 = vector.shape_cast %28 : vector<1x8xi32> to vector<1x1x8xi32>
    tpu.vector_store %arg4[%c0_9, %30, %c0_10], %33 {strides = array<i32>} : memref<1x8x8xi32, #tpu.memory_space<vmem>>, vector<1x1x8xi32>,
    %c0_i32_11 = arith.constant 0 : i32
    %34 = arith.cmpi eq, %25, %c0_i32_11 : i32
    %35 = arith.select %34, %5, %16 : vector<1x8xf32>
    %c2_i32 = arith.constant 2 : i32
    %c0_12 = arith.constant 0 : index
    %36 = arith.index_cast %c2_i32 : i32 to index
    %c0_13 = arith.constant 0 : index
    %37 = vector.load %arg2[%c0_12, %36, %c0_13] : memref<1x8x8xf32, #tpu.memory_space<vmem>>, vector<1x1x8xf32>
    %38 = vector.shape_cast %37 : vector<1x1x8xf32> to vector<1x8xf32>
    %39 = vector.shape_cast %38 : vector<1x8xf32> to vector<1x1x8xf32>
    %40 = vector.shape_cast %0 : vector<8x8xf32> to vector<1x8x8xf32>
    %41 = vector.broadcast %39 : vector<1x1x8xf32> to vector<1x8x8xf32>
    %42 = arith.addf %41, %40 : vector<1x8x8xf32>
    %43 = vector.shape_cast %16 : vector<1x8xf32> to vector<1x8x1xf32>
    %44 = vector.broadcast %43 : vector<1x8x1xf32> to vector<1x8x8xf32>
    %45 = arith.addf %42, %44 : vector<1x8x8xf32>
    %cst_14 = arith.constant dense<0xFF800000> : vector<1x8xf32>
    %46 = vector.multi_reduction <maximumf>, %45, %cst_14 [1] : vector<1x8x8xf32> to vector<1x8xf32>
    %47 = vector.shape_cast %46 : vector<1x8xf32> to vector<1x1x8xf32>
    %48 = vector.broadcast %47 : vector<1x1x8xf32> to vector<1x8x8xf32>
    %49 = arith.cmpf oeq, %45, %48 : vector<1x8x8xf32>
    %c8_i32_15 = arith.constant 8 : i32
    %50 = vector.broadcast %c8_i32_15 : i32 to vector<1x8x8xi32>
    %51 = arith.select %49, %1, %50 : vector<1x8x8xi1>, vector<1x8x8xi32>
    %cst_16 = arith.constant dense<2147483647> : vector<1x8xi32>
    %52 = vector.multi_reduction <minsi>, %51, %cst_16 [1] : vector<1x8x8xi32> to vector<1x8xi32>
    %53 = arith.index_cast %arg0 : i32 to index
    %54 = arith.index_cast %c2_i32 : i32 to index
    %55 = memref.load %arg1[%53, %54] : memref<2x8xi32, #tpu.memory_space<smem>>
    %c0_i32_17 = arith.constant 0 : i32
    %56 = arith.cmpi eq, %55, %c0_i32_17 : i32
    %c0_i32_18 = arith.constant 0 : i32
    %57 = vector.broadcast %c0_i32_18 : i32 to vector<1x8xi32>
    %58 = arith.select %56, %57, %52 : vector<1x8xi32>
    %c1_i32_19 = arith.constant 1 : i32
    %59 = arith.subi %c2_i32, %c1_i32_19 : i32
    %c0_20 = arith.constant 0 : index
    %60 = arith.index_cast %59 : i32 to index
    %c0_21 = arith.constant 0 : index
    %61 = vector.load %arg4[%c0_20, %60, %c0_21] : memref<1x8x8xi32, #tpu.memory_space<vmem>>, vector<1x1x8xi32>
    %62 = vector.shape_cast %61 : vector<1x1x8xi32> to vector<1x8xi32>
    %63 = vector.shape_cast %58 : vector<1x8xi32> to vector<1x1x8xi32>
    tpu.vector_store %arg4[%c0_20, %60, %c0_21], %63 {strides = array<i32>} : memref<1x8x8xi32, #tpu.memory_space<vmem>>, vector<1x1x8xi32>,
    %c0_i32_22 = arith.constant 0 : i32
    %64 = arith.cmpi eq, %55, %c0_i32_22 : i32
    %65 = arith.select %64, %35, %46 : vector<1x8xf32>
    %c3_i32 = arith.constant 3 : i32
    %c0_23 = arith.constant 0 : index
    %66 = arith.index_cast %c3_i32 : i32 to index
    %c0_24 = arith.constant 0 : index
    %67 = vector.load %arg2[%c0_23, %66, %c0_24] : memref<1x8x8xf32, #tpu.memory_space<vmem>>, vector<1x1x8xf32>
    %68 = vector.shape_cast %67 : vector<1x1x8xf32> to vector<1x8xf32>
    %69 = vector.shape_cast %68 : vector<1x8xf32> to vector<1x1x8xf32>
    %70 = vector.shape_cast %0 : vector<8x8xf32> to vector<1x8x8xf32>
    %71 = vector.broadcast %69 : vector<1x1x8xf32> to vector<1x8x8xf32>
    %72 = arith.addf %71, %70 : vector<1x8x8xf32>
    %73 = vector.shape_cast %46 : vector<1x8xf32> to vector<1x8x1xf32>
    %74 = vector.broadcast %73 : vector<1x8x1xf32> to vector<1x8x8xf32>
    %75 = arith.addf %72, %74 : vector<1x8x8xf32>
    %cst_25 = arith.constant dense<0xFF800000> : vector<1x8xf32>
    %76 = vector.multi_reduction <maximumf>, %75, %cst_25 [1] : vector<1x8x8xf32> to vector<1x8xf32>
    %77 = vector.shape_cast %76 : vector<1x8xf32> to vector<1x1x8xf32>
    %78 = vector.broadcast %77 : vector<1x1x8xf32> to vector<1x8x8xf32>
    %79 = arith.cmpf oeq, %75, %78 : vector<1x8x8xf32>
    %c8_i32_26 = arith.constant 8 : i32
    %80 = vector.broadcast %c8_i32_26 : i32 to vector<1x8x8xi32>
    %81 = arith.select %79, %1, %80 : vector<1x8x8xi1>, vector<1x8x8xi32>
    %cst_27 = arith.constant dense<2147483647> : vector<1x8xi32>
    %82 = vector.multi_reduction <minsi>, %81, %cst_27 [1] : vector<1x8x8xi32> to vector<1x8xi32>
    %83 = arith.index_cast %arg0 : i32 to index
    %84 = arith.index_cast %c3_i32 : i32 to index
    %85 = memref.load %arg1[%83, %84] : memref<2x8xi32, #tpu.memory_space<smem>>
    %c0_i32_28 = arith.constant 0 : i32
    %86 = arith.cmpi eq, %85, %c0_i32_28 : i32
    %c0_i32_29 = arith.constant 0 : i32
    %87 = vector.broadcast %c0_i32_29 : i32 to vector<1x8xi32>
    %88 = arith.select %86, %87, %82 : vector<1x8xi32>
    %c1_i32_30 = arith.constant 1 : i32
    %89 = arith.subi %c3_i32, %c1_i32_30 : i32
    %c0_31 = arith.constant 0 : index
    %90 = arith.index_cast %89 : i32 to index
    %c0_32 = arith.constant 0 : index
    %91 = vector.load %arg4[%c0_31, %90, %c0_32] : memref<1x8x8xi32, #tpu.memory_space<vmem>>, vector<1x1x8xi32>
    %92 = vector.shape_cast %91 : vector<1x1x8xi32> to vector<1x8xi32>
    %93 = vector.shape_cast %88 : vector<1x8xi32> to vector<1x1x8xi32>
    tpu.vector_store %arg4[%c0_31, %90, %c0_32], %93 {strides = array<i32>} : memref<1x8x8xi32, #tpu.memory_space<vmem>>, vector<1x1x8xi32>,
    %c0_i32_33 = arith.constant 0 : i32
    %94 = arith.cmpi eq, %85, %c0_i32_33 : i32
    %95 = arith.select %94, %65, %76 : vector<1x8xf32>
    %c4_i32 = arith.constant 4 : i32
    %c0_34 = arith.constant 0 : index
    %96 = arith.index_cast %c4_i32 : i32 to index
    %c0_35 = arith.constant 0 : index
    %97 = vector.load %arg2[%c0_34, %96, %c0_35] : memref<1x8x8xf32, #tpu.memory_space<vmem>>, vector<1x1x8xf32>
    %98 = vector.shape_cast %97 : vector<1x1x8xf32> to vector<1x8xf32>
    %99 = vector.shape_cast %98 : vector<1x8xf32> to vector<1x1x8xf32>
    %100 = vector.shape_cast %0 : vector<8x8xf32> to vector<1x8x8xf32>
    %101 = vector.broadcast %99 : vector<1x1x8xf32> to vector<1x8x8xf32>
    %102 = arith.addf %101, %100 : vector<1x8x8xf32>
    %103 = vector.shape_cast %76 : vector<1x8xf32> to vector<1x8x1xf32>
    %104 = vector.broadcast %103 : vector<1x8x1xf32> to vector<1x8x8xf32>
    %105 = arith.addf %102, %104 : vector<1x8x8xf32>
    %cst_36 = arith.constant dense<0xFF800000> : vector<1x8xf32>
    %106 = vector.multi_reduction <maximumf>, %105, %cst_36 [1] : vector<1x8x8xf32> to vector<1x8xf32>
    %107 = vector.shape_cast %106 : vector<1x8xf32> to vector<1x1x8xf32>
    %108 = vector.broadcast %107 : vector<1x1x8xf32> to vector<1x8x8xf32>
    %109 = arith.cmpf oeq, %105, %108 : vector<1x8x8xf32>
    %c8_i32_37 = arith.constant 8 : i32
    %110 = vector.broadcast %c8_i32_37 : i32 to vector<1x8x8xi32>
    %111 = arith.select %109, %1, %110 : vector<1x8x8xi1>, vector<1x8x8xi32>
    %cst_38 = arith.constant dense<2147483647> : vector<1x8xi32>
    %112 = vector.multi_reduction <minsi>, %111, %cst_38 [1] : vector<1x8x8xi32> to vector<1x8xi32>
    %113 = arith.index_cast %arg0 : i32 to index
    %114 = arith.index_cast %c4_i32 : i32 to index
    %115 = memref.load %arg1[%113, %114] : memref<2x8xi32, #tpu.memory_space<smem>>
    %c0_i32_39 = arith.constant 0 : i32
    %116 = arith.cmpi eq, %115, %c0_i32_39 : i32
    %c0_i32_40 = arith.constant 0 : i32
    %117 = vector.broadcast %c0_i32_40 : i32 to vector<1x8xi32>
    %118 = arith.select %116, %117, %112 : vector<1x8xi32>
    %c1_i32_41 = arith.constant 1 : i32
    %119 = arith.subi %c4_i32, %c1_i32_41 : i32
    %c0_42 = arith.constant 0 : index
    %120 = arith.index_cast %119 : i32 to index
    %c0_43 = arith.constant 0 : index
    %121 = vector.load %arg4[%c0_42, %120, %c0_43] : memref<1x8x8xi32, #tpu.memory_space<vmem>>, vector<1x1x8xi32>
    %122 = vector.shape_cast %121 : vector<1x1x8xi32> to vector<1x8xi32>
    %123 = vector.shape_cast %118 : vector<1x8xi32> to vector<1x1x8xi32>
    tpu.vector_store %arg4[%c0_42, %120, %c0_43], %123 {strides = array<i32>} : memref<1x8x8xi32, #tpu.memory_space<vmem>>, vector<1x1x8xi32>,
    %c0_i32_44 = arith.constant 0 : i32
    %124 = arith.cmpi eq, %115, %c0_i32_44 : i32
    %125 = arith.select %124, %95, %106 : vector<1x8xf32>
    %c5_i32 = arith.constant 5 : i32
    %c0_45 = arith.constant 0 : index
    %126 = arith.index_cast %c5_i32 : i32 to index
    %c0_46 = arith.constant 0 : index
    %127 = vector.load %arg2[%c0_45, %126, %c0_46] : memref<1x8x8xf32, #tpu.memory_space<vmem>>, vector<1x1x8xf32>
    %128 = vector.shape_cast %127 : vector<1x1x8xf32> to vector<1x8xf32>
    %129 = vector.shape_cast %128 : vector<1x8xf32> to vector<1x1x8xf32>
    %130 = vector.shape_cast %0 : vector<8x8xf32> to vector<1x8x8xf32>
    %131 = vector.broadcast %129 : vector<1x1x8xf32> to vector<1x8x8xf32>
    %132 = arith.addf %131, %130 : vector<1x8x8xf32>
    %133 = vector.shape_cast %106 : vector<1x8xf32> to vector<1x8x1xf32>
    %134 = vector.broadcast %133 : vector<1x8x1xf32> to vector<1x8x8xf32>
    %135 = arith.addf %132, %134 : vector<1x8x8xf32>
    %cst_47 = arith.constant dense<0xFF800000> : vector<1x8xf32>
    %136 = vector.multi_reduction <maximumf>, %135, %cst_47 [1] : vector<1x8x8xf32> to vector<1x8xf32>
    %137 = vector.shape_cast %136 : vector<1x8xf32> to vector<1x1x8xf32>
    %138 = vector.broadcast %137 : vector<1x1x8xf32> to vector<1x8x8xf32>
    %139 = arith.cmpf oeq, %135, %138 : vector<1x8x8xf32>
    %c8_i32_48 = arith.constant 8 : i32
    %140 = vector.broadcast %c8_i32_48 : i32 to vector<1x8x8xi32>
    %141 = arith.select %139, %1, %140 : vector<1x8x8xi1>, vector<1x8x8xi32>
    %cst_49 = arith.constant dense<2147483647> : vector<1x8xi32>
    %142 = vector.multi_reduction <minsi>, %141, %cst_49 [1] : vector<1x8x8xi32> to vector<1x8xi32>
    %143 = arith.index_cast %arg0 : i32 to index
    %144 = arith.index_cast %c5_i32 : i32 to index
    %145 = memref.load %arg1[%143, %144] : memref<2x8xi32, #tpu.memory_space<smem>>
    %c0_i32_50 = arith.constant 0 : i32
    %146 = arith.cmpi eq, %145, %c0_i32_50 : i32
    %c0_i32_51 = arith.constant 0 : i32
    %147 = vector.broadcast %c0_i32_51 : i32 to vector<1x8xi32>
    %148 = arith.select %146, %147, %142 : vector<1x8xi32>
    %c1_i32_52 = arith.constant 1 : i32
    %149 = arith.subi %c5_i32, %c1_i32_52 : i32
    %c0_53 = arith.constant 0 : index
    %150 = arith.index_cast %149 : i32 to index
    %c0_54 = arith.constant 0 : index
    %151 = vector.load %arg4[%c0_53, %150, %c0_54] : memref<1x8x8xi32, #tpu.memory_space<vmem>>, vector<1x1x8xi32>
    %152 = vector.shape_cast %151 : vector<1x1x8xi32> to vector<1x8xi32>
    %153 = vector.shape_cast %148 : vector<1x8xi32> to vector<1x1x8xi32>
    tpu.vector_store %arg4[%c0_53, %150, %c0_54], %153 {strides = array<i32>} : memref<1x8x8xi32, #tpu.memory_space<vmem>>, vector<1x1x8xi32>,
    %c0_i32_55 = arith.constant 0 : i32
    %154 = arith.cmpi eq, %145, %c0_i32_55 : i32
    %155 = arith.select %154, %125, %136 : vector<1x8xf32>
    %c6_i32 = arith.constant 6 : i32
    %c0_56 = arith.constant 0 : index
    %156 = arith.index_cast %c6_i32 : i32 to index
    %c0_57 = arith.constant 0 : index
    %157 = vector.load %arg2[%c0_56, %156, %c0_57] : memref<1x8x8xf32, #tpu.memory_space<vmem>>, vector<1x1x8xf32>
    %158 = vector.shape_cast %157 : vector<1x1x8xf32> to vector<1x8xf32>
    %159 = vector.shape_cast %158 : vector<1x8xf32> to vector<1x1x8xf32>
    %160 = vector.shape_cast %0 : vector<8x8xf32> to vector<1x8x8xf32>
    %161 = vector.broadcast %159 : vector<1x1x8xf32> to vector<1x8x8xf32>
    %162 = arith.addf %161, %160 : vector<1x8x8xf32>
    %163 = vector.shape_cast %136 : vector<1x8xf32> to vector<1x8x1xf32>
    %164 = vector.broadcast %163 : vector<1x8x1xf32> to vector<1x8x8xf32>
    %165 = arith.addf %162, %164 : vector<1x8x8xf32>
    %cst_58 = arith.constant dense<0xFF800000> : vector<1x8xf32>
    %166 = vector.multi_reduction <maximumf>, %165, %cst_58 [1] : vector<1x8x8xf32> to vector<1x8xf32>
    %167 = vector.shape_cast %166 : vector<1x8xf32> to vector<1x1x8xf32>
    %168 = vector.broadcast %167 : vector<1x1x8xf32> to vector<1x8x8xf32>
    %169 = arith.cmpf oeq, %165, %168 : vector<1x8x8xf32>
    %c8_i32_59 = arith.constant 8 : i32
    %170 = vector.broadcast %c8_i32_59 : i32 to vector<1x8x8xi32>
    %171 = arith.select %169, %1, %170 : vector<1x8x8xi1>, vector<1x8x8xi32>
    %cst_60 = arith.constant dense<2147483647> : vector<1x8xi32>
    %172 = vector.multi_reduction <minsi>, %171, %cst_60 [1] : vector<1x8x8xi32> to vector<1x8xi32>
    %173 = arith.index_cast %arg0 : i32 to index
    %174 = arith.index_cast %c6_i32 : i32 to index
    %175 = memref.load %arg1[%173, %174] : memref<2x8xi32, #tpu.memory_space<smem>>
    %c0_i32_61 = arith.constant 0 : i32
    %176 = arith.cmpi eq, %175, %c0_i32_61 : i32
    %c0_i32_62 = arith.constant 0 : i32
    %177 = vector.broadcast %c0_i32_62 : i32 to vector<1x8xi32>
    %178 = arith.select %176, %177, %172 : vector<1x8xi32>
    %c1_i32_63 = arith.constant 1 : i32
    %179 = arith.subi %c6_i32, %c1_i32_63 : i32
    %c0_64 = arith.constant 0 : index
    %180 = arith.index_cast %179 : i32 to index
    %c0_65 = arith.constant 0 : index
    %181 = vector.load %arg4[%c0_64, %180, %c0_65] : memref<1x8x8xi32, #tpu.memory_space<vmem>>, vector<1x1x8xi32>
    %182 = vector.shape_cast %181 : vector<1x1x8xi32> to vector<1x8xi32>
    %183 = vector.shape_cast %178 : vector<1x8xi32> to vector<1x1x8xi32>
    tpu.vector_store %arg4[%c0_64, %180, %c0_65], %183 {strides = array<i32>} : memref<1x8x8xi32, #tpu.memory_space<vmem>>, vector<1x1x8xi32>,
    %c0_i32_66 = arith.constant 0 : i32
    %184 = arith.cmpi eq, %175, %c0_i32_66 : i32
    %185 = arith.select %184, %155, %166 : vector<1x8xf32>
    %c7_i32 = arith.constant 7 : i32
    %c0_67 = arith.constant 0 : index
    %186 = arith.index_cast %c7_i32 : i32 to index
    %c0_68 = arith.constant 0 : index
    %187 = vector.load %arg2[%c0_67, %186, %c0_68] : memref<1x8x8xf32, #tpu.memory_space<vmem>>, vector<1x1x8xf32>
    %188 = vector.shape_cast %187 : vector<1x1x8xf32> to vector<1x8xf32>
    %189 = vector.shape_cast %188 : vector<1x8xf32> to vector<1x1x8xf32>
    %190 = vector.shape_cast %0 : vector<8x8xf32> to vector<1x8x8xf32>
    %191 = vector.broadcast %189 : vector<1x1x8xf32> to vector<1x8x8xf32>
    %192 = arith.addf %191, %190 : vector<1x8x8xf32>
    %193 = vector.shape_cast %166 : vector<1x8xf32> to vector<1x8x1xf32>
    %194 = vector.broadcast %193 : vector<1x8x1xf32> to vector<1x8x8xf32>
    %195 = arith.addf %192, %194 : vector<1x8x8xf32>
    %cst_69 = arith.constant dense<0xFF800000> : vector<1x8xf32>
    %196 = vector.multi_reduction <maximumf>, %195, %cst_69 [1] : vector<1x8x8xf32> to vector<1x8xf32>
    %197 = vector.shape_cast %196 : vector<1x8xf32> to vector<1x1x8xf32>
    %198 = vector.broadcast %197 : vector<1x1x8xf32> to vector<1x8x8xf32>
    %199 = arith.cmpf oeq, %195, %198 : vector<1x8x8xf32>
    %c8_i32_70 = arith.constant 8 : i32
    %200 = vector.broadcast %c8_i32_70 : i32 to vector<1x8x8xi32>
    %201 = arith.select %199, %1, %200 : vector<1x8x8xi1>, vector<1x8x8xi32>
    %cst_71 = arith.constant dense<2147483647> : vector<1x8xi32>
    %202 = vector.multi_reduction <minsi>, %201, %cst_71 [1] : vector<1x8x8xi32> to vector<1x8xi32>
    %203 = arith.index_cast %arg0 : i32 to index
    %204 = arith.index_cast %c7_i32 : i32 to index
    %205 = memref.load %arg1[%203, %204] : memref<2x8xi32, #tpu.memory_space<smem>>
    %c0_i32_72 = arith.constant 0 : i32
    %206 = arith.cmpi eq, %205, %c0_i32_72 : i32
    %c0_i32_73 = arith.constant 0 : i32
    %207 = vector.broadcast %c0_i32_73 : i32 to vector<1x8xi32>
    %208 = arith.select %206, %207, %202 : vector<1x8xi32>
    %c1_i32_74 = arith.constant 1 : i32
    %209 = arith.subi %c7_i32, %c1_i32_74 : i32
    %c0_75 = arith.constant 0 : index
    %210 = arith.index_cast %209 : i32 to index
    %c0_76 = arith.constant 0 : index
    %211 = vector.load %arg4[%c0_75, %210, %c0_76] : memref<1x8x8xi32, #tpu.memory_space<vmem>>, vector<1x1x8xi32>
    %212 = vector.shape_cast %211 : vector<1x1x8xi32> to vector<1x8xi32>
    %213 = vector.shape_cast %208 : vector<1x8xi32> to vector<1x1x8xi32>
    tpu.vector_store %arg4[%c0_75, %210, %c0_76], %213 {strides = array<i32>} : memref<1x8x8xi32, #tpu.memory_space<vmem>>, vector<1x1x8xi32>,
    %c0_i32_77 = arith.constant 0 : i32
    %214 = arith.cmpi eq, %205, %c0_i32_77 : i32
    %215 = arith.select %214, %185, %196 : vector<1x8xf32>
    %c7_i32_78 = arith.constant 7 : i32
    %c0_i32_79 = arith.constant 0 : i32
    %216 = vector.broadcast %c0_i32_79 : i32 to vector<1x8xi32>
    %c0_80 = arith.constant 0 : index
    %c7 = arith.constant 7 : index
    %c0_81 = arith.constant 0 : index
    %217 = vector.load %arg4[%c0_80, %c7, %c0_81] : memref<1x8x8xi32, #tpu.memory_space<vmem>>, vector<1x1x8xi32>
    %218 = vector.shape_cast %217 : vector<1x1x8xi32> to vector<1x8xi32>
    %219 = vector.shape_cast %216 : vector<1x8xi32> to vector<1x1x8xi32>
    tpu.vector_store %arg4[%c0_80, %c7, %c0_81], %219 {strides = array<i32>} : memref<1x8x8xi32, #tpu.memory_space<vmem>>, vector<1x1x8xi32>,
    %c0_82 = arith.constant 0 : index
    %c0_83 = arith.constant 0 : index
    %c0_84 = arith.constant 0 : index
    %220 = vector.load %arg5[%c0_82, %c0_83, %c0_84] : memref<1x1x8xf32, #tpu.memory_space<vmem>>, vector<1x1x8xf32>
    %221 = vector.shape_cast %220 : vector<1x1x8xf32> to vector<1x8xf32>
    %222 = vector.shape_cast %215 : vector<1x8xf32> to vector<1x1x8xf32>
    tpu.vector_store %arg5[%c0_82, %c0_83, %c0_84], %222 {strides = array<i32>} : memref<1x1x8xf32, #tpu.memory_space<vmem>>, vector<1x1x8xf32>,
    return
  }
  func.func @transform_0(%arg0: i32, %arg1: memref<2x8xi32, #tpu.memory_space<smem>>) -> (i32, i32, i32) {
    %c0_i32 = arith.constant 0 : i32
    %c0_i32_0 = arith.constant 0 : i32
    %c0_i32_1 = arith.constant 0 : i32
    return %arg0, %c0_i32, %c0_i32_0 : i32, i32, i32
  }
  func.func @transform_1(%arg0: i32, %arg1: memref<2x8xi32, #tpu.memory_space<smem>>) -> (i32, i32) {
    %c0_i32 = arith.constant 0 : i32
    %c0_i32_0 = arith.constant 0 : i32
    %c0_i32_1 = arith.constant 0 : i32
    return %c0_i32, %c0_i32_0 : i32, i32
  }
  func.func @transform_2(%arg0: i32, %arg1: memref<2x8xi32, #tpu.memory_space<smem>>) -> (i32, i32, i32) {
    %c0_i32 = arith.constant 0 : i32
    %c0_i32_0 = arith.constant 0 : i32
    %c0_i32_1 = arith.constant 0 : i32
    return %arg0, %c0_i32, %c0_i32_0 : i32, i32, i32
  }
  func.func @transform_3(%arg0: i32, %arg1: memref<2x8xi32, #tpu.memory_space<smem>>) -> (i32, i32, i32) {
    %c0_i32 = arith.constant 0 : i32
    %c0_i32_0 = arith.constant 0 : i32
    %c0_i32_1 = arith.constant 0 : i32
    return %arg0, %c0_i32, %c0_i32_0 : i32, i32, i32
  }
}

</mosaic_0001>

<bundles_post_ra>
// kernel: custom-call.2
= control target key start
LH: loop header
LB: loop body
LE: loop exit
PB: predicated region body
PF: predicated region fallthrough
CT: control target
= control target key end

     0   :  { %s6_s0 = inlined_call_operand.vmem [shape: s32[7,2], index: 0, kind: output, shape index: {}]  }

// kernel: crf_forward.1
= control target key start
LH: loop header
LB: loop body
LE: loop exit
PB: predicated region body
PF: predicated region fallthrough
CT: control target
= control target key end

     0   :  { %s790_s18 = smov [#allocation3]   ;;  %s1068_s0 = inlined_call_operand.hbm [shape: s32[2,8], index: 0, kind: input, shape index: {}]   ;;  %s1069_s1 = inlined_call_operand.hbm [shape: f32[2,8,8], index: 1, kind: input, shape index: {}]   ;;  %s1070_s2 = inlined_call_operand.hbm [shape: f32[8,8], index: 2, kind: input, shape index: {}]   ;;  %s1071_s3 = inlined_call_operand.vmem [shape: s32[2,8,8], index: 3, kind: output, shape index: {0}]   ;;  %s1072_s4 = inlined_call_operand.vmem [shape: f32[2,1,8], index: 4, kind: output, shape index: {1}]  }
   0x1   :  { %s11_s17 = sshll.u32 %s1068_s0, 4  ;;  %s12_s17 = int_to_ptr.hbm [resolvable:$true] %s11_s17 }
   0x2   :  { %14 = dma.hbm_to_smem %s12_s17, 32, %s790_s18, [#allocation2] }
   0x3   :  { %764 = dma.done.wait [#allocation2], 32 }
   0x4   :  { %765 = vsyncadd [#allocation2], 4294967264 }
   0x5   :  { %17 = sfence }
   0x6   :  { %18 = vsyncpa [#allocation5], 0 }
   0x7   :  { %20 = vsyncpa [#allocation5 + $0x1], 0 }
   0x8   :  { %21 = vsyncpa [#allocation7], 0  ;;  %s821_s19 = smov 0   ;;  %s823_s20 = smov 0  }
   0x9   :  { %s825_s21 = smov 0   ;;  %s827_s22 = smov 0  }
   0xa LB: > { %s840_s0 = sadd.s32 4294967295, %s788_s22   ;;  %p47_p0 = scmp.ne.s32.totalorder %s780_s20, %s776_s19  ;;  %s788_s22 = sphi %s827_s22, %s1093_s22   ;;  %s784_s21 = sphi %s825_s21, %s1092_s21   ;;  %s780_s20 = sphi %s823_s20, %s1091_s20   ;;  %s776_s19 = sphi %s821_s19, %s1090_s19  }
   0xb   : > { %p48_p1 = scmp.eq.s32.totalorder %s840_s0, 0  ;;  %p602_p2 = scmp.ge.s32.totalorder %s788_s22, 1 }
   0xc   : > { %p131_p3 = scmp.lt.s32.totalorder %s788_s22, 3  ;;  %s143_s26 = sshll.u32 %s1070_s2, 4  ;;  %s144_s26 = int_to_ptr.hbm [resolvable:$true] %s143_s26 }
   0xd   : > { %p848_p4 = por %p48_p1, %p47_p0  ;;  %s791_s28 = smov [#allocation6]  }
   0xe   : > { %p855_p5 = pnand %p602_p2, %p131_p3  ;;  %s145_s29 = sshll.u32 %s791_s28, 4  ;;  %s146_s29 = int_to_ptr.vmem [resolvable:$true] %s145_s29 }
   0xf   : > { %s864_s30 = sadd.s32 1, %s788_s22   ;;  %s34_s5 = sadd.s32 1, %s784_s21 }
  0x10   : > { %p620_p6 = pneg %p855_p5  ;;  %s31_s6 = ssub.s32 %s788_s22, %s864_s30 }
  0x11   : > { %p32_p8 = scmp.eq.s32.totalorder %s31_s6, 0  ;;  %p41_p9 = scmp.ne.s32.totalorder %s784_s21, %s780_s20 }
  0x12   : > { %p621_p7 = pnand %p620_p6, %p48_p1  ;;  %p42_p10 = scmp.eq.s32.totalorder %s788_s22, 0 }
  0x13   : > { %p629_p11 = scmp.lt.s32.totalorder %s788_s22, 2  ;;  %s156_s8 = sand.u32 1, %s784_s21  }
  0x14   : > { %623 = dma.hbm_to_vmem [thread:$0]  (!%p621_p7), %s144_s26, 128, %s146_s29, [#allocation7]  }
  0x15   : > { %s874_s7 = scalar_select %p32_p8, %s784_s21, %s34_s5  }
  0x16   : > { %p43_p12 = por %p42_p10, %p41_p9  ;;  %s605_s9 = sshll.u32 %s156_s8, 3 }
  0x17   : > { %s606_s10 = sshll.u32 %s788_s22, 3  ;;  %s160_s14 = scalar_lea.vmem [#allocation4], %s605_s9 }
  0x18   : > { %s164_s13 = scalar_lea.hbm %s1069_s1, %s606_s10  ;;  %s168_s15 = sshll.u32 %s160_s14, 4  ;;  %s169_s15 = int_to_ptr.vmem [resolvable:$true] %s168_s15 }
  0x19   : > { %s166_s16 = sshll.u32 %s164_s13, 4  ;;  %p881_p13 = pnand %p629_p11, %p43_p12  ;;  %s167_s16 = int_to_ptr.hbm [resolvable:$true] %s166_s16 }
  0x1a   : > { %s157_s18 = scalar_lea.sflag [#allocation5], %s156_s8  ;;  %s718_s19 = sshra.s32 %s167_s16, 4  ;;  %s719_s19 = int_to_ptr.hbm [resolvable:$true] %s718_s19 }
  0x1b   : > { %s720_s24 = scalar_lea.hbm %s719_s19, 8  ;;  %p722_p2 = pneg %p881_p13 }
  0x1c   : > { %p721_p0 = scmp.ne.s32.totalorder %s719_s19, %s720_s24  ;;  %s725_s26 = scalar_lea.hbm %s1069_s1, 16 }
  0x1d   : > { %p726_p7 = scmp.lt.s32.totalorder %s719_s19, %s1069_s1  ;;  %p727_p8 = scmp.lt.s32.totalorder %s725_s26, %s720_s24 }
  0x1e   : > { %p723_p3 = pnand %p722_p2, %p721_p0 }
  0x1f   : > { %p728_p9 = por %p727_p8, %p726_p7 }
  0x20   : > { %p724_p6 = pneg %p723_p3 }
  0x22   : > { %p729_p10 = pnand %p728_p9, %p724_p6 }
  0x24   : > { %732 = shalt.err (!%p729_p10)
}
  0x25   : > { %627 = dma.hbm_to_vmem [thread:$0]  (!%p881_p13), %s167_s16, 128, %s169_s15, %s157_s18  }
  0x26   : > { %177 = sbr.rel (%p855_p5) target bundleno = 937 (0x3a9), region = 28  ;;  %s179_s5 = sand.u32 (!%p855_p5), 1, %s780_s20  }
  0x27   : > { %s608_s6 = sshll.u32 (!%p855_p5), %s179_s5, 3  ;;  %s180_s8 = scalar_lea.sflag (!%p855_p5), [#allocation5], %s179_s5 }
  0x28   : > { %s898_s9 = scalar_lea.vmem (!%p855_p5), [#allocation4], %s608_s6 }
  0x2b   : > { %767 = dma.done.wait (%p848_p4), %s180_s8, 128  }
  0x2c   : > { %769 = vsyncadd (%p848_p4), %s180_s8, 4294967168 }
  0x2d   : > { %771 = dma.done.wait (%p48_p1), [#allocation7], 128  }
  0x2e   : > { %773 = vsyncadd (%p48_p1), [#allocation7], 4294967168  ;;  %v222_v0 = vlaneseq  ;;  %p214_p5 = scmp.lt.s32.totalorder %s840_s0, 1  ;;  %vm268_vm0 = vcmask 57344   ;;  %v792_v2 = vmov 0   ;;  %v925_v3 = vld [vmem:[#allocation6] sm:$0xff] }
  0x2f   : > { %v224_v4 = vld [vmem:[%s898_s9] sm:$0x1]  ;;  %v226_v5 = vrot.slane %v925_v3, 6  ;;  %s930_s13 = sshll.u32 %s840_s0, 7  ;;  %v669_v8 = vld [vmem:[%s898_s9 + $0x1] ss:$0 sm:$0xff] }
  0x30   : > { %v909_v1 = vshrl.u32 %v222_v0, 7  ;;  %s912_s27 = scalar_select %p214_p5, %s840_s0, 1  ;;  %v231_v9 = vadd.f32 %v669_v8, %v925_v3  ;;  %vm240_vm1 = vcmask 64512   ;;  %v670_v31 = vld [vmem:[%s898_s9 + $0x2] ss:$0 sm:$0xff] }
  0x31   : > { %v228_v6 = vadd.f32 %v226_v5, %v224_v4  ;;  %s261_s14 = sadd.s32 1, %s930_s13  ;;  %s300_s0 = sadd.s32 2, %s930_s13  ;;  %v273_v32 = vadd.f32 %v670_v31, %v925_v3  ;;  %v671_v54 = vld [vmem:[%s898_s9 + $0x3] ss:$0 sm:$0xff] }
  0x32   : > { %666 = vset.pattern.permute.xlu0 %v909_v1  ;;  %s610_s23 = sshll.u32 %s912_s27, 3  ;;  %667 = vset.pattern.permute.xlu1 %v909_v1  ;;  %s262_s15 = sld [smem:[#allocation3 + %s261_s14]]  ;;  %v311_v55 = vadd.f32 %v671_v54, %v925_v3 }
  0x33   : > { %s920_s12 = scalar_lea.vmem %s1071_s3, %s610_s23  ;;  %668 = vset.pattern.permute.xlu2 %v909_v1  ;;  %v232_v7 = vperm.slane %v228_v6, 0  ;;  %s301_s17 = sld [smem:[#allocation3 + %s300_s0]] }
  0x34   : > { %499 = vst.msk [vmem:[%s920_s12 + $0x7] sm:$0x1] %vm268_vm0, %v792_v2  ;;  %s338_s19 = sadd.s32 3, %s930_s13  ;;  %s376_s25 = sadd.s32 4, %s930_s13 }
  0x35   : > { %s339_s24 = sld [smem:[#allocation3 + %s338_s19]]  ;;  %s414_s29 = sadd.s32 5, %s930_s13 }
  0x36   : > { %s377_s26 = sld [smem:[#allocation3 + %s376_s25]]  ;;  %s452_s8 = sadd.s32 6, %s930_s13 }
  0x37   : > { %s415_s5 = sld [smem:[#allocation3 + %s414_s29]]  ;;  %s490_s11 = sadd.s32 7, %s930_s13 }
  0x38   : > { %p263_p1 = scmp.eq.s32.totalorder %s262_s15, 0  ;;  %s453_s23 = sld [smem:[#allocation3 + %s452_s8]] }
  0x39   : > { %p302_p4 = scmp.eq.s32.totalorder %s301_s17, 0  ;;  %s491_s14 = sld [smem:[#allocation3 + %s490_s11]] }
  0x3a   : > { %237 = vperm.xlu0 %666, %v232_v7   ;;  %s264_s16 = scalar_select %p263_p1, 1, 0 }
  0x3b   : > { %s303_s18 = scalar_select %p302_p4, 1, 0 }
  0x3c   : > { %v265_v16 = vstv %s264_s16  ;;  %p340_p11 = scmp.eq.s32.totalorder %s339_s24, 0  ;;  %p378_p12 = scmp.eq.s32.totalorder %s377_s26, 0 }
  0x3d   : > { %vm936_vm2 = vcmp.eq.s32.totalorder %v265_v16, 1  ;;  %v304_v39 = vstv %s303_s18  ;;  %p416_p13 = scmp.eq.s32.totalorder %s415_s5, 0  ;;  %s220_s16 = scalar_lea.vmem %s1072_s4, %s912_s27 }
  0x3e   : > { %vm952_vm7 = vcmp.eq.s32.totalorder %v304_v39, 1  ;;  %s341_s22 = scalar_select %p340_p11, 1, 0 }
  0x3f   : > { %s379_s28 = scalar_select %p378_p12, 1, 0 }
  0x40   : > { %v342_v62 = vstv %s341_s22  ;;  %s417_s6 = scalar_select %p416_p13, 1, 0 }
  0x41   : > { %vm970_vm12 = vcmp.eq.s32.totalorder %v342_v62, 1  ;;  %p454_p0 = scmp.eq.s32.totalorder %s453_s23, 0  ;;  %p492_p2 = scmp.eq.s32.totalorder %s491_s14, 0 }
  0x43   : > { %s455_s10 = scalar_select %p454_p0, 1, 0 }
  0x44   : > { %s493_s15 = scalar_select %p492_p2, 1, 0 }
  0xac   : > { %v238_v10 = vpop.permute.xlu0 %237 }
  0xad   : > { %v239_v11 = vadd.f32 %v238_v10, %v231_v9 }
  0xaf   : > { %v241_v12 = vsel %vm240_vm1, %v239_v11, -inf }
  0xb0   : > { %v242_v13 = vrot.slane %v241_v12, 4 }
  0xb2   : > { %v243_v14 = vmax.f32 %v241_v12, %v242_v13 }
  0xb4   : > { %v244_v15 = vrot.slane %v243_v14, 2 }
  0xb6   : > { %v245_v17 = vmax.f32 %v243_v14, %v244_v15  ;;  %v672_v15 = vld [vmem:[%s898_s9 + $0x4] ss:$0 sm:$0xff] }
  0xb7   : > { %v349_v16 = vadd.f32 %v672_v15, %v925_v3 }
  0xb8   : > { %v246_v18 = vrot.slane %v245_v17, 1 }
  0xba   : > { %v247_v20 = vmax.f32 %v245_v17, %v246_v18 }
  0xbc   : > { %vm248_vm3 = vcmp.eq.f32.partialorder %v239_v11, %v247_v20  ;;  %v270_v21 = vsel %vm936_vm2, %v228_v6, %v247_v20  ;;  %278 = vperm.xlu0 %666, %v247_v20  }
  0xbd   : > { %v249_v22 = vsel %vm248_vm3, %v909_v1, 8 }
  0xbe   : > { %v250_v23 = vsel %vm240_vm1, %v249_v22, 2147483647 }
  0xbf   : > { %v251_v24 = vrot.slane %v250_v23, 4 }
  0xc1   : > { %vm252_vm4 = vcmp.lt.s32.totalorder %v250_v23, %v251_v24 }
  0xc2   : > { %v253_v25 = vsel %vm252_vm4, %v250_v23, %v251_v24  ;;  %v380_v23 = vstv %s379_s28 }
  0xc3   : > { %v254_v26 = vrot.slane %v253_v25, 2  ;;  %vm987_vm3 = vcmp.eq.s32.totalorder %v380_v23, 1 }
  0xc5   : > { %vm255_vm5 = vcmp.lt.s32.totalorder %v253_v25, %v254_v26 }
  0xc6   : > { %v256_v27 = vsel %vm255_vm5, %v253_v25, %v254_v26 }
  0xc7   : > { %v257_v28 = vrot.slane %v256_v27, 1 }
  0xc9   : > { %vm258_vm6 = vcmp.lt.s32.totalorder %v256_v27, %v257_v28 }
  0xca   : > { %v259_v29 = vsel %vm258_vm6, %v256_v27, %v257_v28 }
  0xcb   : > { %v267_v30 = vsel %vm936_vm2, 0, %v259_v29 }
  0xcc   : > { %269 = vst.msk [vmem:[%s920_s12] sm:$0x1] %vm268_vm0, %v267_v30 }
 0x12e   : > { %v279_v33 = vpop.permute.xlu0 %278 }
 0x12f   : > { %v280_v34 = vadd.f32 %v279_v33, %v273_v32 }
 0x131   : > { %v281_v35 = vsel %vm240_vm1, %v280_v34, -inf }
 0x132   : > { %v282_v36 = vrot.slane %v281_v35, 4 }
 0x134   : > { %v283_v37 = vmax.f32 %v281_v35, %v282_v36 }
 0x136   : > { %v284_v38 = vrot.slane %v283_v37, 2 }
 0x138   : > { %v285_v40 = vmax.f32 %v283_v37, %v284_v38  ;;  %v673_v38 = vld [vmem:[%s898_s9 + $0x5] ss:$0 sm:$0xff] }
 0x139   : > { %v387_v39 = vadd.f32 %v673_v38, %v925_v3 }
 0x13a   : > { %v286_v41 = vrot.slane %v285_v40, 1 }
 0x13c   : > { %v287_v43 = vmax.f32 %v285_v40, %v286_v41 }
 0x13e   : > { %vm288_vm8 = vcmp.eq.f32.partialorder %v280_v34, %v287_v43  ;;  %v958_v44 = vsel %vm952_vm7, %v270_v21, %v287_v43  ;;  %316 = vperm.xlu1 %667, %v287_v43  }
 0x13f   : > { %v289_v45 = vsel %vm288_vm8, %v909_v1, 8 }
 0x140   : > { %v290_v46 = vsel %vm240_vm1, %v289_v45, 2147483647 }
 0x141   : > { %v291_v47 = vrot.slane %v290_v46, 4 }
 0x143   : > { %vm292_vm9 = vcmp.lt.s32.totalorder %v290_v46, %v291_v47 }
 0x144   : > { %v293_v48 = vsel %vm292_vm9, %v290_v46, %v291_v47  ;;  %v418_v46 = vstv %s417_s6 }
 0x145   : > { %v294_v49 = vrot.slane %v293_v48, 2  ;;  %vm1005_vm8 = vcmp.eq.s32.totalorder %v418_v46, 1 }
 0x147   : > { %vm295_vm10 = vcmp.lt.s32.totalorder %v293_v48, %v294_v49 }
 0x148   : > { %v296_v50 = vsel %vm295_vm10, %v293_v48, %v294_v49 }
 0x149   : > { %v297_v51 = vrot.slane %v296_v50, 1 }
 0x14b   : > { %vm298_vm11 = vcmp.lt.s32.totalorder %v296_v50, %v297_v51 }
 0x14c   : > { %v299_v52 = vsel %vm298_vm11, %v296_v50, %v297_v51 }
 0x14d   : > { %v306_v53 = vsel %vm952_vm7, 0, %v299_v52 }
 0x14e   : > { %307 = vst.msk [vmem:[%s920_s12 + $0x1] sm:$0x1] %vm268_vm0, %v306_v53 }
 0x1b0   : > { %v317_v56 = vpop.permute.xlu1 %316 }
 0x1b1   : > { %v318_v57 = vadd.f32 %v317_v56, %v311_v55 }
 0x1b3   : > { %v319_v58 = vsel %vm240_vm1, %v318_v57, -inf }
 0x1b4   : > { %v320_v59 = vrot.slane %v319_v58, 4 }
 0x1b6   : > { %v321_v60 = vmax.f32 %v319_v58, %v320_v59 }
 0x1b8   : > { %v322_v61 = vrot.slane %v321_v60, 2 }
 0x1ba   : > { %v323_v63 = vmax.f32 %v321_v60, %v322_v61  ;;  %v674_v61 = vld [vmem:[%s898_s9 + $0x6] ss:$0 sm:$0xff] }
 0x1bb   : > { %v425_v62 = vadd.f32 %v674_v61, %v925_v3 }
 0x1bc   : > { %v324_v0 = vrot.slane %v323_v63, 1 }
 0x1be   : > { %v325_v4 = vmax.f32 %v323_v63, %v324_v0 }
 0x1c0   : > { %vm326_vm13 = vcmp.eq.f32.partialorder %v318_v57, %v325_v4  ;;  %v346_v5 = vsel %vm970_vm12, %v958_v44, %v325_v4  ;;  %354 = vperm.xlu1 %667, %v325_v4  }
 0x1c1   : > { %v327_v6 = vsel %vm326_vm13, %v909_v1, 8 }
 0x1c2   : > { %v328_v7 = vsel %vm240_vm1, %v327_v6, 2147483647 }
 0x1c3   : > { %v329_v8 = vrot.slane %v328_v7, 4 }
 0x1c5   : > { %vm330_vm14 = vcmp.lt.s32.totalorder %v328_v7, %v329_v8 }
 0x1c6   : > { %v331_v9 = vsel %vm330_vm14, %v328_v7, %v329_v8  ;;  %v456_v7 = vstv %s455_s10 }
 0x1c7   : > { %v332_v10 = vrot.slane %v331_v9, 2  ;;  %vm1022_vm13 = vcmp.eq.s32.totalorder %v456_v7, 1 }
 0x1c9   : > { %vm333_vm15 = vcmp.lt.s32.totalorder %v331_v9, %v332_v10 }
 0x1ca   : > { %v334_v11 = vsel %vm333_vm15, %v331_v9, %v332_v10 }
 0x1cb   : > { %v335_v12 = vrot.slane %v334_v11, 1 }
 0x1cd   : > { %vm336_vm2 = vcmp.lt.s32.totalorder %v334_v11, %v335_v12 }
 0x1ce   : > { %v337_v13 = vsel %vm336_vm2, %v334_v11, %v335_v12 }
 0x1cf   : > { %v344_v14 = vsel %vm970_vm12, 0, %v337_v13 }
 0x1d0   : > { %345 = vst.msk [vmem:[%s920_s12 + $0x2] sm:$0x1] %vm268_vm0, %v344_v14 }
 0x232   : > { %v355_v17 = vpop.permute.xlu1 %354 }
 0x233   : > { %v356_v18 = vadd.f32 %v355_v17, %v349_v16 }
 0x235   : > { %v357_v19 = vsel %vm240_vm1, %v356_v18, -inf }
 0x236   : > { %v358_v20 = vrot.slane %v357_v19, 4 }
 0x238   : > { %v359_v21 = vmax.f32 %v357_v19, %v358_v20 }
 0x23a   : > { %v360_v22 = vrot.slane %v359_v21, 2 }
 0x23c   : > { %v361_v24 = vmax.f32 %v359_v21, %v360_v22  ;;  %v675_v22 = vld [vmem:[%s898_s9 + $0x7] ss:$0 sm:$0xff] }
 0x23d   : > { %v463_v23 = vadd.f32 %v675_v22, %v925_v3 }
 0x23e   : > { %v362_v25 = vrot.slane %v361_v24, 1 }
 0x240   : > { %v363_v27 = vmax.f32 %v361_v24, %v362_v25 }
 0x242   : > { %vm364_vm4 = vcmp.eq.f32.partialorder %v356_v18, %v363_v27  ;;  %v993_v28 = vsel %vm987_vm3, %v346_v5, %v363_v27  ;;  %392 = vperm.xlu2 %668, %v363_v27  }
 0x243   : > { %v365_v29 = vsel %vm364_vm4, %v909_v1, 8 }
 0x244   : > { %v366_v30 = vsel %vm240_vm1, %v365_v29, 2147483647 }
 0x245   : > { %v367_v31 = vrot.slane %v366_v30, 4 }
 0x247   : > { %vm368_vm5 = vcmp.lt.s32.totalorder %v366_v30, %v367_v31 }
 0x248   : > { %v369_v32 = vsel %vm368_vm5, %v366_v30, %v367_v31  ;;  %v494_v30 = vstv %s493_s15 }
 0x249   : > { %v370_v33 = vrot.slane %v369_v32, 2  ;;  %vm1038_vm4 = vcmp.eq.s32.totalorder %v494_v30, 1 }
 0x24b   : > { %vm371_vm6 = vcmp.lt.s32.totalorder %v369_v32, %v370_v33 }
 0x24c   : > { %v372_v34 = vsel %vm371_vm6, %v369_v32, %v370_v33 }
 0x24d   : > { %v373_v35 = vrot.slane %v372_v34, 1 }
 0x24f   : > { %vm374_vm7 = vcmp.lt.s32.totalorder %v372_v34, %v373_v35 }
 0x250   : > { %v375_v36 = vsel %vm374_vm7, %v372_v34, %v373_v35 }
 0x251   : > { %v382_v37 = vsel %vm987_vm3, 0, %v375_v36 }
 0x252   : > { %383 = vst.msk [vmem:[%s920_s12 + $0x3] sm:$0x1] %vm268_vm0, %v382_v37 }
 0x29c   : > { %v393_v40 = vpop.permute.xlu2 %392 }
 0x29d   : > { %v394_v41 = vadd.f32 %v393_v40, %v387_v39 }
 0x29f   : > { %v395_v42 = vsel %vm240_vm1, %v394_v41, -inf }
 0x2a0   : > { %v396_v43 = vrot.slane %v395_v42, 4 }
 0x2a2   : > { %v397_v44 = vmax.f32 %v395_v42, %v396_v43 }
 0x2a4   : > { %v398_v45 = vrot.slane %v397_v44, 2 }
 0x2a6   : > { %v399_v47 = vmax.f32 %v397_v44, %v398_v45 }
 0x2a8   : > { %v400_v48 = vrot.slane %v399_v47, 1 }
 0x2aa   : > { %v401_v50 = vmax.f32 %v399_v47, %v400_v48 }
 0x2ac   : > { %vm402_vm9 = vcmp.eq.f32.partialorder %v394_v41, %v401_v50  ;;  %v422_v51 = vsel %vm1005_vm8, %v993_v28, %v401_v50  ;;  %430 = vperm.xlu2 %668, %v401_v50  }
 0x2ad   : > { %v403_v52 = vsel %vm402_vm9, %v909_v1, 8 }
 0x2ae   : > { %v404_v53 = vsel %vm240_vm1, %v403_v52, 2147483647 }
 0x2af   : > { %v405_v54 = vrot.slane %v404_v53, 4 }
 0x2b1   : > { %vm406_vm10 = vcmp.lt.s32.totalorder %v404_v53, %v405_v54 }
 0x2b2   : > { %v407_v55 = vsel %vm406_vm10, %v404_v53, %v405_v54 }
 0x2b3   : > { %v408_v56 = vrot.slane %v407_v55, 2 }
 0x2b5   : > { %vm409_vm11 = vcmp.lt.s32.totalorder %v407_v55, %v408_v56 }
 0x2b6   : > { %v410_v57 = vsel %vm409_vm11, %v407_v55, %v408_v56 }
 0x2b7   : > { %v411_v58 = vrot.slane %v410_v57, 1 }
 0x2b9   : > { %vm412_vm12 = vcmp.lt.s32.totalorder %v410_v57, %v411_v58 }
 0x2ba   : > { %v413_v59 = vsel %vm412_vm12, %v410_v57, %v411_v58 }
 0x2bb   : > { %v420_v60 = vsel %vm1005_vm8, 0, %v413_v59 }
 0x2bc   : > { %421 = vst.msk [vmem:[%s920_s12 + $0x4] sm:$0x1] %vm268_vm0, %v420_v60 }
 0x306   : > { %v431_v63 = vpop.permute.xlu2 %430 }
 0x307   : > { %v432_v0 = vadd.f32 %v431_v63, %v425_v62 }
 0x309   : > { %v433_v2 = vsel %vm240_vm1, %v432_v0, -inf }
 0x30a   : > { %v434_v4 = vrot.slane %v433_v2, 4 }
 0x30c   : > { %v435_v5 = vmax.f32 %v433_v2, %v434_v4 }
 0x30e   : > { %v436_v6 = vrot.slane %v435_v5, 2 }
 0x310   : > { %v437_v8 = vmax.f32 %v435_v5, %v436_v6 }
 0x312   : > { %v438_v9 = vrot.slane %v437_v8, 1 }
 0x314   : > { %v439_v11 = vmax.f32 %v437_v8, %v438_v9 }
 0x316   : > { %vm440_vm14 = vcmp.eq.f32.partialorder %v432_v0, %v439_v11  ;;  %468 = vperm.xlu0 %666, %v439_v11   ;;  %v460_v12 = vsel %vm1022_vm13, %v422_v51, %v439_v11 }
 0x317   : > { %v441_v13 = vsel %vm440_vm14, %v909_v1, 8 }
 0x318   : > { %v442_v14 = vsel %vm240_vm1, %v441_v13, 2147483647 }
 0x319   : > { %v443_v15 = vrot.slane %v442_v14, 4 }
 0x31b   : > { %vm444_vm15 = vcmp.lt.s32.totalorder %v442_v14, %v443_v15 }
 0x31c   : > { %v445_v16 = vsel %vm444_vm15, %v442_v14, %v443_v15 }
 0x31d   : > { %v446_v17 = vrot.slane %v445_v16, 2 }
 0x31f   : > { %vm447_vm2 = vcmp.lt.s32.totalorder %v445_v16, %v446_v17 }
 0x320   : > { %v448_v18 = vsel %vm447_vm2, %v445_v16, %v446_v17 }
 0x321   : > { %v449_v19 = vrot.slane %v448_v18, 1 }
 0x323   : > { %vm450_vm3 = vcmp.lt.s32.totalorder %v448_v18, %v449_v19 }
 0x324   : > { %v451_v20 = vsel %vm450_vm3, %v448_v18, %v449_v19 }
 0x325   : > { %v458_v21 = vsel %vm1022_vm13, 0, %v451_v20 }
 0x326   : > { %459 = vst.msk [vmem:[%s920_s12 + $0x5] sm:$0x1] %vm268_vm0, %v458_v21 }
 0x388   : > { %v469_v24 = vpop.permute.xlu0 %468 }
 0x389   : > { %v470_v25 = vadd.f32 %v469_v24, %v463_v23 }
 0x38b   : > { %v471_v26 = vsel %vm240_vm1, %v470_v25, -inf }
 0x38c   : > { %v472_v27 = vrot.slane %v471_v26, 4 }
 0x38e   : > { %v473_v28 = vmax.f32 %v471_v26, %v472_v27 }
 0x390   : > { %v474_v29 = vrot.slane %v473_v28, 2 }
 0x392   : > { %v475_v31 = vmax.f32 %v473_v28, %v474_v29 }
 0x394   : > { %v476_v32 = vrot.slane %v475_v31, 1 }
 0x396   : > { %v477_v3 = vmax.f32 %v475_v31, %v476_v32 }
 0x398   : > { %vm478_vm5 = vcmp.eq.f32.partialorder %v470_v25, %v477_v3  ;;  %v498_v34 = vsel %vm1038_vm4, %v460_v12, %v477_v3 }
 0x399   : > { %v479_v35 = vsel %vm478_vm5, %v909_v1, 8  ;;  %500 = vst.msk [vmem:[%s220_s16] sm:$0x1] %vm268_vm0, %v498_v34 }
 0x39a   : > { %v480_v36 = vsel %vm240_vm1, %v479_v35, 2147483647 }
 0x39b   : > { %v481_v37 = vrot.slane %v480_v36, 4 }
 0x39d   : > { %vm482_vm6 = vcmp.lt.s32.totalorder %v480_v36, %v481_v37 }
 0x39e   : > { %v483_v38 = vsel %vm482_vm6, %v480_v36, %v481_v37 }
 0x39f   : > { %v484_v39 = vrot.slane %v483_v38, 2 }
 0x3a1   : > { %vm485_vm7 = vcmp.lt.s32.totalorder %v483_v38, %v484_v39 }
 0x3a2   : > { %v486_v40 = vsel %vm485_vm7, %v483_v38, %v484_v39 }
 0x3a3   : > { %v487_v41 = vrot.slane %v486_v40, 1 }
 0x3a5   : > { %vm488_vm8 = vcmp.lt.s32.totalorder %v486_v40, %v487_v41 }
 0x3a6   : > { %v489_v42 = vsel %vm488_vm8, %v486_v40, %v487_v41 }
 0x3a7   : > { %v496_v43 = vsel %vm1038_vm4, 0, %v489_v42 }
 0x3a8   : > { %497 = vst.msk [vmem:[%s920_s12 + $0x6] sm:$0x1] %vm268_vm0, %v496_v43 }
 0x3a9 PF: > { %p24_p3 = scmp.ge.s32.totalorder %s864_s30, 4   ;;  %s1090_s19 = smov %s780_s20 }
 0x3aa   : > { %s1091_s20 = smov %s784_s21  ;;  %s1092_s21 = smov %s874_s7 }
 0x3ab   : > { %s1093_s22 = smov %s864_s30  ;;  %26 = sbr.rel (!%p24_p3) target bundleno = 10 (0xa), region = 84 }
 0x3b0   :  { %532 = vsyncpa [#allocation5], 1 }
 0x3b1   :  { %534 = vsyncpa [#allocation5 + $0x1], 1 }
 0x3b2   :  { %535 = vsyncpa [#allocation7], 1 }

</bundles_post_ra>
